<compile_context>
chip_gen: v5e
topology: v5e:2x2
jax: 0.10.0
libtpu: 0.0.40
codegen_flags: <defaults>
</compile_context>

<pallas_src>
import functools
import math

import jax
import jax.numpy as jnp
from jax import lax
from jax.experimental import pallas as pl
from jax.experimental.pallas import tpu as pltpu


def _round_up(x, m):
    return ((x + m - 1) // m) * m


# ----------------------------------------------------------------------------- kernel


def _topk_keep_mask_chunk(y, k, n_valid):
    """Keep only the k largest-|y| entries per row of a (rows, Np) f32 chunk."""
    np_cols = y.shape[-1]
    if n_valid < np_cols:
        col = lax.broadcasted_iota(jnp.int32, y.shape, 1)
        ay = jnp.where(col < n_valid, jnp.abs(y), -jnp.inf)  # exclude padded columns
    else:
        ay = jnp.abs(y)

    # Peel off the (k-1) largest |y| per row; the max of what remains is the k-th
    # largest value, i.e. the keep-threshold (no dead final mask update).
    def peel(_, cur):
        t = jnp.max(cur, axis=-1, keepdims=True)
        return jnp.where(cur >= t, -jnp.inf, cur)

    if k > 1:
        unroll = True if (k - 1) <= 8 else 8
        cur = lax.fori_loop(0, k - 1, peel, ay, unroll=unroll)
    else:
        cur = ay
    thresh = jnp.max(cur, axis=-1, keepdims=True)
    return jnp.where(ay >= thresh, y, jnp.zeros_like(y))


def _sparse_linear_kernel(x_ref, w_ref, b_ref, o_ref, *scratch, k, n_valid,
                          row_chunk, acc_is_out):
    # f32 output: accumulate directly into the resident output block (no scratch).
    acc_ref = o_ref if acc_is_out else scratch[0]
    kk = pl.program_id(1)
    last = pl.num_programs(1) - 1

    @pl.when(kk == 0)
    def _init():
        # Initialise with the broadcast bias -> no (tm, Np) add in the epilogue.
        acc_ref[...] = jnp.broadcast_to(b_ref[...].astype(jnp.float32), acc_ref.shape)

    acc_ref[...] += jnp.dot(x_ref[...], w_ref[...],
                            preferred_element_type=jnp.float32)

    dense = (k is None) or (k >= n_valid)
    if dense:
        if not acc_is_out:
            @pl.when(kk == last)
            def _store():
                o_ref[...] = acc_ref[...].astype(o_ref.dtype)
        # else: o_ref already holds the dense result; nothing to do.
    elif k == 0:
        @pl.when(kk == last)
        def _zero():
            o_ref[...] = jnp.zeros_like(o_ref)
    else:
        @pl.when(kk == last)
        def _finalize():
            tm = acc_ref.shape[0]
            n_chunks = tm // row_chunk
            if n_chunks == 1:
                o_ref[...] = _topk_keep_mask_chunk(
                    acc_ref[...], k, n_valid).astype(o_ref.dtype)
            else:
                # Row-chunked epilogue: keep the (row_chunk, Np) peel working set in
                # vregs instead of streaming (tm, Np) temporaries through VMEM.
                @pl.loop(0, n_chunks)
                def _chunk(c):
                    r = pl.multiple_of(c * row_chunk, row_chunk)
                    y = acc_ref[pl.ds(r, row_chunk), :]
                    o_ref[pl.ds(r, row_chunk), :] = _topk_keep_mask_chunk(
                        y, k, n_valid).astype(o_ref.dtype)


# ---------------------------------------------------------------------------- wrapper


def _choose_tm(M):
    """Row-tile choice: minimise M-padding waste, prefer >=2 M tiles (v7x 2-TC
    sharding), then the largest tile (fewest W re-reads from HBM)."""
    Mp8 = _round_up(M, 8)
    if Mp8 <= 128:
        return Mp8
    cands = []
    for tm in sorted({128, 256, 512, min(Mp8, 512)}):
        Mp = _round_up(M, tm)
        cands.append((tm, Mp - M, Mp // tm))
    min_waste = min(w for _, w, _ in cands)
    ok = [c for c in cands if c[1] <= max(min_waste, M // 8)]
    multi = [c for c in ok if c[2] >= 2]
    pool = multi if multi else ok
    return max(t for t, _, _ in pool)


def _choose_tk(K, Np, w_bytes):
    """K-tile choice: keep the W double-buffer within a conservative budget."""
    k128 = _round_up(K, 128)
    for tk in (512, 256, 128):
        if 2 * tk * Np * w_bytes <= 12 * 1024 * 1024:
            return min(tk, k128)
    return min(128, k128)


def _vmem_estimate(tm, tk, Np, x_bytes, w_bytes, out_bytes, acc_is_out):
    return (2 * tm * tk * x_bytes          # X double buffer
            + 2 * tk * Np * w_bytes        # W double buffer
            + 2 * Np * 4                   # bias
            + 2 * tm * Np * out_bytes      # output (resident across kk)
            + (0 if acc_is_out else tm * Np * 4))


def make_sparse_linear(weight, bias, sparse_output=None, *, matmul_dtype=None):
    """Prepare (pad / optionally bf16-cast) the weight ONCE and return forward(x).

    matmul_dtype=jnp.bfloat16 is the fast path (~3x MXU rate, half the W HBM bytes);
    default None keeps f32 semantics identical to the PyTorch module.
    """
    K, N = weight.shape
    Np = _round_up(N, 128)                 # lane-dense output (unmasked full-lane vst)
    w_dtype = jnp.dtype(matmul_dtype) if matmul_dtype is not None else jnp.dtype(weight.dtype)
    w_bytes = w_dtype.itemsize
    tk_eff = _choose_tk(K, Np, w_bytes)
    Kp = _round_up(K, tk_eff)

    wp = weight
    if (Kp, Np) != tuple(weight.shape):
        wp = jnp.pad(weight, ((0, Kp - K), (0, Np - N)))
    if wp.dtype != w_dtype:
        wp = wp.astype(w_dtype)            # pre-cast in the wrapper, not in the kernel
    bp = bias.reshape(1, N)
    if Np != N:
        bp = jnp.pad(bp, ((0, 0), (0, Np - N)))
    bp = bp.astype(jnp.float32)

    def forward(x):
        M, Kx = x.shape
        assert Kx == K, "x / weight inner dims mismatch"
        out_dtype = x.dtype
        acc_is_out = jnp.dtype(out_dtype) == jnp.dtype(jnp.float32)
        x_dtype = w_dtype if matmul_dtype is not None else jnp.dtype(x.dtype)
        x_bytes = jnp.dtype(x_dtype).itemsize
        out_bytes = jnp.dtype(out_dtype).itemsize

        tm_eff = _choose_tm(M)
        while _vmem_estimate(tm_eff, tk_eff, Np, x_bytes, w_bytes,
                             out_bytes, acc_is_out) > (36 << 20):
            new_tm = max(8, _round_up(tm_eff // 2, 8))
            if new_tm == tm_eff:
                break
            tm_eff = new_tm
        Mp = _round_up(M, tm_eff)

        xp = x
        if (Mp, Kp) != tuple(x.shape):
            xp = jnp.pad(x, ((0, Mp - M), (0, Kp - K)))
        if xp.dtype != x_dtype:
            xp = xp.astype(x_dtype)

        row_chunk = next(rc for rc in (32, 16, 8) if tm_eff % rc == 0)
        usage = _vmem_estimate(tm_eff, tk_eff, Np, x_bytes, w_bytes,
                               out_bytes, acc_is_out)
        vmem_limit = int(min(48 << 20, max(16 << 20, usage * 5 // 4)))

        kernel = functools.partial(
            _sparse_linear_kernel, k=sparse_output, n_valid=N,
            row_chunk=row_chunk, acc_is_out=acc_is_out)

        scratch = [] if acc_is_out else [pltpu.VMEM((tm_eff, Np), jnp.float32)]

        out = pl.pallas_call(
            kernel,
            out_shape=jax.ShapeDtypeStruct((Mp, Np), out_dtype),
            grid_spec=pltpu.PrefetchScalarGridSpec(
                num_scalar_prefetch=0,
                grid=(Mp // tm_eff, Kp // tk_eff),
                in_specs=[
                    pl.BlockSpec((tm_eff, tk_eff), lambda i, kk: (i, kk)),  # X tile
                    pl.BlockSpec((tk_eff, Np), lambda i, kk: (kk, 0)),      # W K-tile
                    pl.BlockSpec((1, Np), lambda i, kk: (0, 0)),            # bias
                ],
                out_specs=pl.BlockSpec((tm_eff, Np), lambda i, kk: (i, 0)),
                scratch_shapes=scratch,
            ),
            compiler_params=pltpu.CompilerParams(
                dimension_semantics=("parallel", "arbitrary"),
                vmem_limit_bytes=vmem_limit,
            ),
        )(xp, wp, bp)

        if (Mp, Np) != (M, N):
            out = out[:M, :N]
        return out

    return forward


def sparse_linear_forward(x, weight, bias, sparse_output=None, *, matmul_dtype=None):
    """One-shot convenience wrapper (pads/casts the weight on every call)."""
    return make_sparse_linear(weight, bias, sparse_output,
                              matmul_dtype=matmul_dtype)(x)


# -------------------------------------------------------------------------- reference


def _reference(x, weight, bias, sparse_output):
    y = x @ weight + bias
    if sparse_output is None or sparse_output >= y.shape[-1]:
        return y
    if sparse_output == 0:
        return jnp.zeros_like(y)
    _, idx = jax.lax.top_k(jnp.abs(y), sparse_output)
    mask = jnp.zeros_like(y, dtype=bool)
    rows = jnp.arange(y.shape[0])[:, None]
    mask = mask.at[rows, idx].set(True)
    return jnp.where(mask, y, 0.0)


if __name__ == "__main__":
    key = jax.random.PRNGKey(0)
    kx, kw, kx2, kw3, kx3 = jax.random.split(key, 5)

    # Case 1: mirrors SparseLinear(in_dim=32, out_dim=16, sparse_output=4), batch=8.
    batch, in_dim, out_dim, k = 8, 32, 16, 4
    weight = jax.random.normal(kw, (in_dim, out_dim), dtype=jnp.float32) / math.sqrt(k)
    bias = jnp.zeros((out_dim,), dtype=jnp.float32)
    x = jax.random.normal(kx, (batch, in_dim), dtype=jnp.float32)

    fwd = make_sparse_linear(weight, bias, sparse_output=k)
    out = jax.block_until_ready(fwd(x))
    ref = _reference(x, weight, bias, k)
    assert out.shape == (batch, out_dim)
    assert jnp.allclose(out, ref, atol=1e-5, rtol=1e-5), "case 1 mismatch vs reference"

    # Case 2: dense path (sparse_output=None), batch not a multiple of 8.
    x2 = jax.random.normal(kx2, (5, in_dim), dtype=jnp.float32)
    out2 = jax.block_until_ready(
        sparse_linear_forward(x2, weight, bias, sparse_output=None))
    ref2 = _reference(x2, weight, bias, None)
    assert out2.shape == (5, in_dim and out_dim)
    assert jnp.allclose(out2, ref2, atol=1e-5, rtol=1e-5), "case 2 mismatch vs reference"

    # Case 3: multi-tile path (2 M tiles, 2 K accumulation steps, padded N, chunked
    # top-k epilogue via pl.loop).
    M3, K3, N3, k3 = 160, 1024, 192, 8
    weight3 = jax.random.normal(kw3, (K3, N3), dtype=jnp.float32) / math.sqrt(k3)
    bias3 = jnp.zeros((N3,), dtype=jnp.float32)
    x3 = jax.random.normal(kx3, (M3, K3), dtype=jnp.float32)
    out3 = jax.block_until_ready(
        make_sparse_linear(weight3, bias3, sparse_output=k3)(x3))
    ref3 = _reference(x3, weight3, bias3, k3)
    assert out3.shape == (M3, N3)
    assert jnp.allclose(out3, ref3, atol=1e-3, rtol=1e-4), "case 3 mismatch vs reference"

    print("KERNEL_OK")
</pallas_src>

<mosaic_0001>
module attributes {stable_mosaic.version = 11 : i64} {
  func.func @_sparse_linear_kernel(%arg0: i32, %arg1: i32, %arg2: memref<8x128xf32, #tpu.memory_space<vmem>>, %arg3: memref<128x128xf32, #tpu.memory_space<vmem>>, %arg4: memref<1x128xf32, #tpu.memory_space<vmem>>, %arg5: memref<8x128xf32, #tpu.memory_space<vmem>>) attributes {dimension_semantics = [#tpu.dimension_semantics<parallel>, #tpu.dimension_semantics<arbitrary>], iteration_bounds = array<i64: 1, 1>, scalar_prefetch = 0 : i64, scratch_operands = 0 : i64, tpu.core_type = #tpu.core_type<tc>, window_params = [{transform_indices = @transform_0, window_bounds = array<i64: 8, 128>}, {transform_indices = @transform_1, window_bounds = array<i64: 128, 128>}, {pipeline_mode = #tpu.pipeline_mode<synchronous>, transform_indices = @transform_2, window_bounds = array<i64: 1, 128>}, {transform_indices = @transform_3, window_bounds = array<i64: 8, 128>}]} {
    %c0_i32 = arith.constant 0 : i32
    %0 = arith.cmpi eq, %arg1, %c0_i32 : i32
    %1 = arith.extui %0 : i1 to i32
    %c0_i32_0 = arith.constant 0 : i32
    %2 = arith.cmpi ne, %1, %c0_i32_0 : i32
    scf.if %2 {
      %c0_10 = arith.constant 0 : index
      %c0_11 = arith.constant 0 : index
      %12 = vector.load %arg4[%c0_10, %c0_11] : memref<1x128xf32, #tpu.memory_space<vmem>>, vector<1x128xf32>
      %13 = vector.shape_cast %12 : vector<1x128xf32> to vector<1x128xf32>
      %14 = vector.broadcast %13 : vector<1x128xf32> to vector<8x128xf32>
      %c0_12 = arith.constant 0 : index
      %c0_13 = arith.constant 0 : index
      %15 = vector.load %arg5[%c0_12, %c0_13] : memref<8x128xf32, #tpu.memory_space<vmem>>, vector<8x128xf32>
      tpu.vector_store %arg5[%c0_12, %c0_13], %14 {strides = array<i32>} : memref<8x128xf32, #tpu.memory_space<vmem>>, vector<8x128xf32>,
    } else {
    }
    %c0 = arith.constant 0 : index
    %c0_1 = arith.constant 0 : index
    %3 = vector.load %arg5[%c0, %c0_1] : memref<8x128xf32, #tpu.memory_space<vmem>>, vector<8x128xf32>
    %c0_2 = arith.constant 0 : index
    %c0_3 = arith.constant 0 : index
    %4 = vector.load %arg2[%c0_2, %c0_3] : memref<8x128xf32, #tpu.memory_space<vmem>>, vector<8x128xf32>
    %c0_4 = arith.constant 0 : index
    %c0_5 = arith.constant 0 : index
    %5 = vector.load %arg3[%c0_4, %c0_5] : memref<128x128xf32, #tpu.memory_space<vmem>>, vector<128x128xf32>
    %cst = arith.constant dense<0.000000e+00> : vector<8x128xf32>
    %6 = tpu.matmul %4, %5, %cst {dimension_numbers = #tpu.dot_dimension_numbers<[1], [0], [0], [1], [0, 0, 1, 1], [], []>} : vector<8x128xf32>, vector<128x128xf32>, vector<8x128xf32> -> vector<8x128xf32>
    %7 = arith.addf %3, %6 : vector<8x128xf32>
    %c0_6 = arith.constant 0 : index
    %c0_7 = arith.constant 0 : index
    %8 = vector.load %arg5[%c0_6, %c0_7] : memref<8x128xf32, #tpu.memory_space<vmem>>, vector<8x128xf32>
    tpu.vector_store %arg5[%c0_6, %c0_7], %7 {strides = array<i32>} : memref<8x128xf32, #tpu.memory_space<vmem>>, vector<8x128xf32>,
    %c0_i32_8 = arith.constant 0 : i32
    %9 = arith.cmpi eq, %arg1, %c0_i32_8 : i32
    %10 = arith.extui %9 : i1 to i32
    %c0_i32_9 = arith.constant 0 : i32
    %11 = arith.cmpi ne, %10, %c0_i32_9 : i32
    scf.if %11 {
      %c0_10 = arith.constant 0 : index
      %c0_11 = arith.constant 0 : index
      %12 = vector.load %arg5[%c0_10, %c0_11] : memref<8x128xf32, #tpu.memory_space<vmem>>, vector<8x128xf32>
      %13 = tpu.iota {dimensions = array<i32: 1>} : vector<8x128xi32>
      %c16_i32 = arith.constant 16 : i32
      %14 = vector.broadcast %c16_i32 : i32 to vector<8x128xi32>
      %15 = arith.cmpi slt, %13, %14 : vector<8x128xi32>
      %16 = math.absf %12 : vector<8x128xf32>
      %cst_12 = arith.constant 0xFF800000 : f32
      %17 = vector.broadcast %cst_12 : f32 to vector<8x128xf32>
      %18 = arith.select %15, %16, %17 : vector<8x128xi1>, vector<8x128xf32>
      %c0_i32_13 = arith.constant 0 : i32
      %cst_14 = arith.constant dense<0xFF800000> : vector<8xf32>
      %19 = vector.multi_reduction <maximumf>, %18, %cst_14 [1] : vector<8x128xf32> to vector<8xf32>
      %20 = vector.shape_cast %19 : vector<8xf32> to vector<8x1xf32>
      %21 = vector.broadcast %20 : vector<8x1xf32> to vector<8x128xf32>
      %22 = arith.cmpf oge, %18, %21 : vector<8x128xf32>
      %cst_15 = arith.constant 0xFF800000 : f32
      %23 = vector.broadcast %cst_15 : f32 to vector<8x128xf32>
      %24 = arith.select %22, %23, %18 : vector<8x128xi1>, vector<8x128xf32>
      %c1_i32 = arith.constant 1 : i32
      %cst_16 = arith.constant dense<0xFF800000> : vector<8xf32>
      %25 = vector.multi_reduction <maximumf>, %24, %cst_16 [1] : vector<8x128xf32> to vector<8xf32>
      %26 = vector.shape_cast %25 : vector<8xf32> to vector<8x1xf32>
      %27 = vector.broadcast %26 : vector<8x1xf32> to vector<8x128xf32>
      %28 = arith.cmpf oge, %24, %27 : vector<8x128xf32>
      %cst_17 = arith.constant 0xFF800000 : f32
      %29 = vector.broadcast %cst_17 : f32 to vector<8x128xf32>
      %30 = arith.select %28, %29, %24 : vector<8x128xi1>, vector<8x128xf32>
      %c2_i32 = arith.constant 2 : i32
      %cst_18 = arith.constant dense<0xFF800000> : vector<8xf32>
      %31 = vector.multi_reduction <maximumf>, %30, %cst_18 [1] : vector<8x128xf32> to vector<8xf32>
      %32 = vector.shape_cast %31 : vector<8xf32> to vector<8x1xf32>
      %33 = vector.broadcast %32 : vector<8x1xf32> to vector<8x128xf32>
      %34 = arith.cmpf oge, %30, %33 : vector<8x128xf32>
      %cst_19 = arith.constant 0xFF800000 : f32
      %35 = vector.broadcast %cst_19 : f32 to vector<8x128xf32>
      %36 = arith.select %34, %35, %30 : vector<8x128xi1>, vector<8x128xf32>
      %cst_20 = arith.constant dense<0xFF800000> : vector<8xf32>
      %37 = vector.multi_reduction <maximumf>, %36, %cst_20 [1] : vector<8x128xf32> to vector<8xf32>
      %38 = vector.shape_cast %37 : vector<8xf32> to vector<8x1xf32>
      %39 = vector.broadcast %38 : vector<8x1xf32> to vector<8x128xf32>
      %40 = arith.cmpf oge, %18, %39 : vector<8x128xf32>
      %cst_21 = arith.constant 0.000000e+00 : f32
      %41 = vector.broadcast %cst_21 : f32 to vector<8x128xf32>
      %42 = arith.select %40, %12, %41 : vector<8x128xi1>, vector<8x128xf32>
      %c0_22 = arith.constant 0 : index
      %c0_23 = arith.constant 0 : index
      %43 = vector.load %arg5[%c0_22, %c0_23] : memref<8x128xf32, #tpu.memory_space<vmem>>, vector<8x128xf32>
      tpu.vector_store %arg5[%c0_22, %c0_23], %42 {strides = array<i32>} : memref<8x128xf32, #tpu.memory_space<vmem>>, vector<8x128xf32>,
    } else {
    }
    return
  }
  func.func @transform_0(%arg0: i32, %arg1: i32) -> (i32, i32) {
    %c0_i32 = arith.constant 0 : i32
    return %arg0, %arg1 : i32, i32
  }
  func.func @transform_1(%arg0: i32, %arg1: i32) -> (i32, i32) {
    %c0_i32 = arith.constant 0 : i32
    %c0_i32_0 = arith.constant 0 : i32
    return %arg1, %c0_i32 : i32, i32
  }
  func.func @transform_2(%arg0: i32, %arg1: i32) -> (i32, i32) {
    %c0_i32 = arith.constant 0 : i32
    %c0_i32_0 = arith.constant 0 : i32
    %c0_i32_1 = arith.constant 0 : i32
    return %c0_i32, %c0_i32_0 : i32, i32
  }
  func.func @transform_3(%arg0: i32, %arg1: i32) -> (i32, i32) {
    %c0_i32 = arith.constant 0 : i32
    %c0_i32_0 = arith.constant 0 : i32
    return %arg0, %c0_i32 : i32, i32
  }
}

</mosaic_0001>

<bundles_post_ra>
// kernel: tpu_custom_call.1
= control target key start
LH: loop header
LB: loop body
LE: loop exit
PB: predicated region body
PF: predicated region fallthrough
CT: control target
= control target key end

     0   :  { %8 = vsyncpa [#allocation3], 0  ;;  %s259_s0 = inlined_call_operand.hbm [shape: f32[8,128], index: 0, kind: input, shape index: {}]   ;;  %s260_s1 = inlined_call_operand.hbm [shape: f32[128,128], index: 1, kind: input, shape index: {}]   ;;  %s261_s2 = inlined_call_operand.vmem [shape: f32[1,128], index: 2, kind: input, shape index: {}]   ;;  %s262_s3 = inlined_call_operand.hbm [shape: f32[8,128], index: 3, kind: output, shape index: {}]  }
   0x1   :  { %9 = vsyncpa [#allocation6], 0 }
   0x2   :  { %10 = vsyncpa [#allocation4], 0  ;;  %s16_s14 = sshll.u32 %s259_s0, 4  ;;  %s222_s15 = smov [#allocation2]   ;;  %s17_s14 = int_to_ptr.hbm [resolvable:$true] %s16_s14 }
   0x3   :  { %s18_s16 = sshll.u32 %s222_s15, 4  ;;  %s26_s19 = sshll.u32 %s260_s1, 4  ;;  %s19_s16 = int_to_ptr.vmem [resolvable:$true] %s18_s16  ;;  %s27_s19 = int_to_ptr.hbm [resolvable:$true] %s26_s19 }
   0x4   :  { %21 = dma.hbm_to_vmem [thread:$0]  %s17_s14, 128, %s19_s16, [#allocation3]  }
   0x5   :  { %s223_s20 = smov [#allocation5]   ;;  %s224_s22 = smov 128  }
   0x6   :  { %s28_s21 = sshll.u32 %s223_s20, 4  ;;  %s225_s23 = smov 8   ;;  %s29_s21 = int_to_ptr.vmem [resolvable:$true] %s28_s21 }
   0x7   :  { %34 = dma.hbm_to_vmem [thread:$0]  %s27_s19, 2048, %s29_s21, [#allocation6], %s224_s22, %s224_s22, %s225_s23  }
   0x8   :  { %216 = dma.done.wait [#allocation3], 128  }
   0x9   :  { %217 = vsyncadd [#allocation3], 4294967168 }
   0xa   :  { %218 = dma.done.wait [#allocation6], 2048  }
   0xb   :  { %219 = vsyncadd [#allocation6], 4294965248  ;;  %v71_v0 = vld [vmem:[#allocation5 + $0x78] sm:$0xff]  ;;  %v70_v1 = vld [vmem:[#allocation5 + $0x70] sm:$0xff]  ;;  %v98_v17 = vlaneseq  ;;  %s127_s27 = sshll.u32 %s262_s3, 4  ;;  %s128_s27 = int_to_ptr.hbm [resolvable:$true] %s127_s27 }
   0xc   :  { %72 = vmatpush.msra.mxu0 %v71_v0  ;;  %v69_v2 = vld [vmem:[#allocation5 + $0x68] sm:$0xff]  ;;  %v68_v3 = vld [vmem:[#allocation5 + $0x60] sm:$0xff]  ;;  %v67_v4 = vld [vmem:[#allocation5 + $0x58] sm:$0xff] }
   0xd   :  { %v66_v5 = vld [vmem:[#allocation5 + $0x50] sm:$0xff]  ;;  %v65_v6 = vld [vmem:[#allocation5 + $0x48] sm:$0xff]  ;;  %v64_v7 = vld [vmem:[#allocation5 + $0x40] sm:$0xff]  ;;  %v99_v19 = vand.u32 127, %v98_v17 }
   0xe   :  { %73 = vmatpush.msra.mxu0 %v70_v1  ;;  %v63_v8 = vld [vmem:[#allocation5 + $0x38] sm:$0xff]  ;;  %v62_v9 = vld [vmem:[#allocation5 + $0x30] sm:$0xff]  ;;  %v61_v10 = vld [vmem:[#allocation5 + $0x28] sm:$0xff] }
   0xf   :  { %v60_v11 = vld [vmem:[#allocation5 + $0x20] sm:$0xff]  ;;  %v59_v12 = vld [vmem:[#allocation5 + $0x18] sm:$0xff]  ;;  %v58_v13 = vld [vmem:[#allocation5 + $0x10] sm:$0xff]  ;;  %vm100_vm0 = vcmp.lt.s32.totalorder %v99_v19, 16 }
  0x10   :  { %74 = vmatpush.msra.mxu0 %v69_v2  ;;  %v57_v14 = vld [vmem:[#allocation5 + $0x8] sm:$0xff]  ;;  %v56_v15 = vld [vmem:[#allocation5] sm:$0xff]  ;;  %v55_v16 = vld [vmem:[#allocation2] sm:$0xff] }
  0x11   :  { %v143_v18 = vld [vmem:[%s261_s2] ss:$0 sm:$0xff]  ;;  %s226_s2 = smov [#allocation7]  }
  0x12   :  { %75 = vmatpush.msra.mxu0 %v68_v3  ;;  %s125_s24 = sshll.u32 %s226_s2, 4  ;;  %s126_s24 = int_to_ptr.vmem [resolvable:$true] %s125_s24 }
  0x14   :  { %76 = vmatpush.msra.mxu0 %v67_v4 }
  0x16   :  { %77 = vmatpush.msra.mxu0 %v66_v5 }
  0x18   :  { %78 = vmatpush.msra.mxu0 %v65_v6 }
  0x1a   :  { %79 = vmatpush.msra.mxu0 %v64_v7 }
  0x1c   :  { %80 = vmatpush.msra.mxu0 %v63_v8 }
  0x1e   :  { %81 = vmatpush.msra.mxu0 %v62_v9 }
  0x20   :  { %82 = vmatpush.msra.mxu0 %v61_v10 }
  0x22   :  { %83 = vmatpush.msra.mxu0 %v60_v11 }
  0x24   :  { %84 = vmatpush.msra.mxu0 %v59_v12 }
  0x26   :  { %85 = vmatpush.msra.mxu0 %v58_v13 }
  0x28   :  { %86 = vmatpush.msra.mxu0 %v57_v14 }
  0x2a   :  { %87 = vmatpush.msra.mxu0 %v56_v15 }
  0x2b   :  { %88 = vmatmul.f32.vlgmr.msra.gmra.mxu0 %v55_v16 }
  0xa8   :  { %v89_v20 = vpop.f32.mrf.mxu0 }
  0xa9   :  { %v92_v21 = vadd.f32 %v143_v18, %v89_v20 }
  0xab   :  { %v101_v22 = vand.u32 2147483647, %v92_v21 }
  0xad   :  { %v102_v23 = vsel %vm100_vm0, %v101_v22, -inf }
  0xae   :  { %103 = vmax.xlane.f32.xlu0 %v102_v23 }
 0x121   :  { %v104_v24 = vpop.xlane.xlu0 %103 }
 0x122   :  { %vm105_vm1 = vcmp.ge.f32.partialorder %v102_v23, %v104_v24 }
 0x123   :  { %v106_v25 = vsel %vm105_vm1, -inf, %v102_v23 }
 0x124   :  { %107 = vmax.xlane.f32.xlu0 %v106_v25 }
 0x197   :  { %v108_v26 = vpop.xlane.xlu0 %107 }
 0x198   :  { %vm109_vm2 = vcmp.ge.f32.partialorder %v106_v25, %v108_v26 }
 0x199   :  { %v110_v27 = vsel %vm109_vm2, -inf, %v106_v25 }
 0x19a   :  { %111 = vmax.xlane.f32.xlu1 %v110_v27 }
 0x20d   :  { %v112_v28 = vpop.xlane.xlu1 %111 }
 0x20e   :  { %vm113_vm3 = vcmp.ge.f32.partialorder %v110_v27, %v112_v28 }
 0x20f   :  { %v114_v29 = vsel %vm113_vm3, -inf, %v110_v27 }
 0x210   :  { %115 = vmax.xlane.f32.xlu1 %v114_v29 }
 0x283   :  { %v116_v30 = vpop.xlane.xlu1 %115 }
 0x284   :  { %vm117_vm4 = vcmp.ge.f32.partialorder %v102_v23, %v116_v30 }
 0x285   :  { %v118_v31 = vsel %vm117_vm4, %v92_v21, 0.0 }
 0x286   :  { %119 = vst [vmem:[#allocation7] sm:$0xff] %v118_v31 }
 0x287   :  { %130 = dma.vmem_to_hbm [thread:$0]  %s126_s24, 128, %s128_s27, [#allocation4]  }
 0x288   :  { %220 = dma.done.wait [#allocation4], 128  }
 0x289   :  { %221 = vsyncadd [#allocation4], 4294967168 }
 0x28a   :  { %135 = vsyncpa [#allocation3], 1 }
 0x28b   :  { %136 = vsyncpa [#allocation6], 1 }
 0x28c   :  { %137 = vsyncpa [#allocation4], 1 }

</bundles_post_ra>
